<compile_context>
chip_gen: v5e
topology: v5e:2x2
jax: 0.10.0
libtpu: 0.0.40
codegen_flags: <defaults>
</compile_context>

<pallas_src>
import math
from functools import partial

import jax
import jax.numpy as jnp
from jax import lax
from jax.experimental import pallas as pl
from jax.experimental.pallas import tpu as pltpu


def _regress_subtraction_kernel(pc0_ref, pc1_ref, rot_ref, w_ref, out_ref,
                                acc0_ref, acc1_ref, *, n_total, n_tile,
                                needs_mask):
    # pc0_ref, pc1_ref : (B_T, C, N_T) f32 VMEM tiles of the point clouds
    # rot_ref          : (B_T, 1, 1)   f32 rotation prediction in [-1, 1]
    # w_ref            : (3, 6)        f32 Linear weight, SMEM scalars
    # out_ref          : (B_T, 1, 3)   f32
    # acc0_ref/acc1_ref: (B_T, C)      f32 channel-sum accumulators
    n_idx = pl.program_id(1)
    last_n = pl.num_programs(1) - 1

    @pl.when(n_idx == 0)
    def _init():
        acc0_ref[...] = jnp.zeros_like(acc0_ref)
        acc1_ref[...] = jnp.zeros_like(acc1_ref)

    if needs_mask:
        # Only the final point tile is ragged: keep the hot path a pure
        # load+add and compile the iota/select only behind the last-tile gate.
        @pl.when(n_idx != last_n)
        def _accumulate_full():
            acc0_ref[...] += jnp.sum(pc0_ref[...], axis=-1)
            acc1_ref[...] += jnp.sum(pc1_ref[...], axis=-1)

        @pl.when(n_idx == last_n)
        def _accumulate_masked():
            lane = lax.broadcasted_iota(jnp.int32, (1, 1, n_tile), 2)
            valid = (n_idx * n_tile + lane) < n_total
            acc0_ref[...] += jnp.sum(jnp.where(valid, pc0_ref[...], 0.0), axis=-1)
            acc1_ref[...] += jnp.sum(jnp.where(valid, pc1_ref[...], 0.0), axis=-1)
    else:
        acc0_ref[...] += jnp.sum(pc0_ref[...], axis=-1)
        acc1_ref[...] += jnp.sum(pc1_ref[...], axis=-1)

    @pl.when(n_idx == last_n)
    def _finalize():
        inv_n = jnp.float32(1.0 / n_total)
        m0 = acc0_ref[...] * inv_n          # (B_T, C) means of pc0
        m1 = acc1_ref[...] * inv_n          # (B_T, C) means of pc1

        # Rotate only the mean 3-vector (mean(Rz p) == Rz mean(p)).
        ang = rot_ref[:, 0, :] * jnp.float32(math.pi / 4.0)   # (B_T, 1)
        c = jnp.cos(ang)
        s = jnp.sin(ang)
        x0, y0, z0 = m0[:, 0:1], m0[:, 1:2], m0[:, 2:3]
        feats = (
            c * x0 - s * y0,                # rotated x mean
            s * x0 + c * y0,                # rotated y mean
            z0,                             # z unchanged
            m1[:, 0:1], m1[:, 1:2], m1[:, 2:3],
        )

        # 6 -> 3 projection as broadcast FMAs with SMEM scalar weights (VPU).
        cols = []
        for j in range(3):
            col = feats[0] * w_ref[j, 0]
            for k in range(1, 6):
                col = col + feats[k] * w_ref[j, k]
            cols.append(col)
        out_ref[:, 0, :] = jnp.concatenate(cols, axis=-1).astype(out_ref.dtype)


def regress_subtraction(pc0, pc1, weight, rot_pred=None, *,
                        target_block_bytes=4 << 20, b_tile=8, n_tile=None):
    """pc0, pc1: (B, C, N) with C >= 3; weight: (3, 6);
    rot_pred: (B,) in [-1, 1] or None (None -> no rotation)."""
    B, C0, N = pc0.shape
    B1, C1, N1 = pc1.shape
    assert B1 == B and N1 == N and C0 >= 3 and C1 >= 3

    pc0 = jnp.asarray(pc0, jnp.float32)
    pc1 = jnp.asarray(pc1, jnp.float32)
    if rot_pred is None:
        rot = jnp.zeros((B, 1, 1), jnp.float32)            # angle 0 -> identity
    else:
        rot = jnp.asarray(rot_pred, jnp.float32).reshape(B, 1, 1)
    w = jnp.asarray(weight, jnp.float32)

    # Batch tile: at most `b_tile` rows, but guarantee >= 2 batch tiles when
    # B >= 2 so the "parallel" axis can shard across the two v7x TensorCores.
    if B >= 2:
        b_t = min(b_tile, (B + 1) // 2)
    else:
        b_t = 1
        # TODO(synk): for B == 1 the batch axis cannot feed both v7x cores; a
        # split of the point reduction over a leading parallel axis with a
        # cross-core combine would recover that second core.
    grid_b = pl.cdiv(B, b_t)

    # Point tile: size each input block to ~target_block_bytes (2-4 MiB hits
    # ~85% of HBM roofline), lane-aligned to 128, capped at the full N.
    c_max = max(C0, C1)
    if n_tile is None:
        n_target = max(1, target_block_bytes // (b_t * c_max * 4))
        n_t = max(128, (n_target // 128) * 128)
    else:
        n_t = max(1, int(n_tile))
    n_t = min(n_t, N)
    if n_t < N and n_t % 128 != 0:
        n_t = min(max(128, (n_t // 128) * 128), N)
    grid_n = pl.cdiv(N, n_t)
    needs_mask = (N % n_t) != 0

    # Double-buffered working set (2 inputs x 2 pipeline buffers) + slack.
    # Clamp <= 48 MiB so it is safe on v7x (64 MiB physical VMEM) and raise
    # past the 16 MiB v5e default.
    working_set = 2 * b_t * (C0 + C1) * n_t * 4
    vmem_limit = int(min(48 << 20, max(32 << 20, working_set + (8 << 20))))

    kernel = partial(_regress_subtraction_kernel,
                     n_total=N, n_tile=n_t, needs_mask=needs_mask)

    # Note: trailing ragged batch tile (B % b_t != 0) is safe — padded rows
    # read unspecified data but their outputs are discarded on writeback, and
    # the reduction is strictly per-row.
    out3 = pl.pallas_call(
        kernel,
        out_shape=jax.ShapeDtypeStruct((B, 1, 3), jnp.float32),
        grid=(grid_b, grid_n),
        in_specs=[
            pl.BlockSpec((b_t, C0, n_t), lambda b, n: (b, 0, n)),
            pl.BlockSpec((b_t, C1, n_t), lambda b, n: (b, 0, n)),
            pl.BlockSpec((b_t, 1, 1), lambda b, n: (b, 0, 0)),
            pl.BlockSpec(memory_space=pltpu.MemorySpace.SMEM),   # weight (3,6)
        ],
        out_specs=pl.BlockSpec((b_t, 1, 3), lambda b, n: (b, 0, 0)),
        scratch_shapes=[
            pltpu.VMEM((b_t, C0), jnp.float32),
            pltpu.VMEM((b_t, C1), jnp.float32),
        ],
        compiler_params=pltpu.CompilerParams(
            dimension_semantics=("parallel", "arbitrary"),
            vmem_limit_bytes=vmem_limit),
    )(pc0, pc1, rot, w)
    return out3.reshape(B, 3)


def _reference(pc0, pc1, weight, rot_pred):
    ang = rot_pred * (jnp.pi / 4.0)
    c = jnp.cos(ang)[:, None]
    s = jnp.sin(ang)[:, None]
    x0 = pc0[:, 0, :]
    y0 = pc0[:, 1, :]
    z0 = pc0[:, 2, :]
    rot = jnp.stack([c * x0 - s * y0, s * x0 + c * y0, z0], axis=1)
    m0 = jnp.mean(rot, axis=2)
    m1 = jnp.mean(pc1[:, :3, :], axis=2)
    x = jnp.concatenate([m0, m1], axis=1)
    return x @ weight.T


if __name__ == "__main__":
    key = jax.random.PRNGKey(0)
    k_pc0, k_pc1, k_rot, k_w = jax.random.split(key, 4)

    B, C, N = 2, 4, 16
    pc0 = jax.random.normal(k_pc0, (B, C, N), jnp.float32)
    pc1 = jax.random.normal(k_pc1, (B, C, N), jnp.float32)
    rot_pred = jax.random.uniform(k_rot, (B,), jnp.float32, -1.0, 1.0)

    # nn.Linear(6, 3, bias=False) weight: shape (3, 6), uniform(-1/sqrt(6), 1/sqrt(6))
    bound = 1.0 / math.sqrt(6.0)
    weight = jax.random.uniform(k_w, (3, 6), jnp.float32, -bound, bound)

    out = jax.block_until_ready(regress_subtraction(pc0, pc1, weight, rot_pred))
    ref = _reference(pc0, pc1, weight, rot_pred)
    assert out.shape == (B, 3)
    assert jnp.allclose(out, ref, atol=1e-5, rtol=1e-5)

    # N-tiled path with a ragged final point tile (gated in-kernel masking).
    N2 = 300
    pc0b = jax.random.normal(jax.random.PRNGKey(1), (B, C, N2), jnp.float32)
    pc1b = jax.random.normal(jax.random.PRNGKey(2), (B, C, N2), jnp.float32)
    out2 = jax.block_until_ready(
        regress_subtraction(pc0b, pc1b, weight, rot_pred, n_tile=128))
    ref2 = _reference(pc0b, pc1b, weight, rot_pred)
    assert jnp.allclose(out2, ref2, atol=1e-5, rtol=1e-5)

    # Ragged batch tiling (B % b_t != 0) plus the no-rotation (rot_pred=None) path.
    B3 = 5
    pc0c = jax.random.normal(jax.random.PRNGKey(3), (B3, C, N2), jnp.float32)
    pc1c = jax.random.normal(jax.random.PRNGKey(4), (B3, C, N2), jnp.float32)
    out3 = jax.block_until_ready(regress_subtraction(pc0c, pc1c, weight, None))
    ref3 = _reference(pc0c, pc1c, weight, jnp.zeros((B3,), jnp.float32))
    assert out3.shape == (B3, 3)
    assert jnp.allclose(out3, ref3, atol=1e-5, rtol=1e-5)

    print("KERNEL_OK")
</pallas_src>

<mosaic_0001>
module attributes {stable_mosaic.version = 11 : i64} {
  func.func @_regress_subtraction_kernel(%arg0: i32, %arg1: i32, %arg2: memref<1x4x16xf32, #tpu.memory_space<vmem>>, %arg3: memref<1x4x16xf32, #tpu.memory_space<vmem>>, %arg4: memref<1x1x1xf32, #tpu.memory_space<vmem>>, %arg5: memref<3x6xf32, #tpu.memory_space<smem>>, %arg6: memref<1x1x3xf32, #tpu.memory_space<vmem>>, %arg7: memref<1x4xf32, #tpu.memory_space<vmem>>, %arg8: memref<1x4xf32, #tpu.memory_space<vmem>>) attributes {dimension_semantics = [#tpu.dimension_semantics<parallel>, #tpu.dimension_semantics<arbitrary>], iteration_bounds = array<i64: 2, 1>, scalar_prefetch = 0 : i64, scratch_operands = 2 : i64, tpu.core_type = #tpu.core_type<tc>, window_params = [{transform_indices = @transform_0, window_bounds = array<i64: 1, 4, 16>}, {transform_indices = @transform_1, window_bounds = array<i64: 1, 4, 16>}, {transform_indices = @transform_2, window_bounds = array<i64: 1, 1, 1>}, {transform_indices = @transform_3, window_bounds = array<i64: 3, 6>}, {transform_indices = @transform_4, window_bounds = array<i64: 1, 1, 3>}]} {
    %c0_i32 = arith.constant 0 : i32
    %0 = arith.cmpi eq, %arg1, %c0_i32 : i32
    %1 = arith.extui %0 : i1 to i32
    %c0_i32_0 = arith.constant 0 : i32
    %2 = arith.cmpi ne, %1, %c0_i32_0 : i32
    scf.if %2 {
      %cst_17 = arith.constant 0.000000e+00 : f32
      %16 = vector.broadcast %cst_17 : f32 to vector<1x4xf32>
      %c0_18 = arith.constant 0 : index
      %c0_19 = arith.constant 0 : index
      %17 = vector.load %arg7[%c0_18, %c0_19] : memref<1x4xf32, #tpu.memory_space<vmem>>, vector<1x4xf32>
      tpu.vector_store %arg7[%c0_18, %c0_19], %16 {strides = array<i32>} : memref<1x4xf32, #tpu.memory_space<vmem>>, vector<1x4xf32>,
      %cst_20 = arith.constant 0.000000e+00 : f32
      %18 = vector.broadcast %cst_20 : f32 to vector<1x4xf32>
      %c0_21 = arith.constant 0 : index
      %c0_22 = arith.constant 0 : index
      %19 = vector.load %arg8[%c0_21, %c0_22] : memref<1x4xf32, #tpu.memory_space<vmem>>, vector<1x4xf32>
      tpu.vector_store %arg8[%c0_21, %c0_22], %18 {strides = array<i32>} : memref<1x4xf32, #tpu.memory_space<vmem>>, vector<1x4xf32>,
    } else {
    }
    %c0 = arith.constant 0 : index
    %c0_1 = arith.constant 0 : index
    %3 = vector.load %arg7[%c0, %c0_1] : memref<1x4xf32, #tpu.memory_space<vmem>>, vector<1x4xf32>
    %c0_2 = arith.constant 0 : index
    %c0_3 = arith.constant 0 : index
    %c0_4 = arith.constant 0 : index
    %4 = vector.load %arg2[%c0_2, %c0_3, %c0_4] : memref<1x4x16xf32, #tpu.memory_space<vmem>>, vector<1x4x16xf32>
    %cst = arith.constant dense<0.000000e+00> : vector<1x4xf32>
    %5 = vector.multi_reduction <add>, %4, %cst [2] : vector<1x4x16xf32> to vector<1x4xf32>
    %6 = arith.addf %3, %5 : vector<1x4xf32>
    %c0_5 = arith.constant 0 : index
    %c0_6 = arith.constant 0 : index
    %7 = vector.load %arg7[%c0_5, %c0_6] : memref<1x4xf32, #tpu.memory_space<vmem>>, vector<1x4xf32>
    tpu.vector_store %arg7[%c0_5, %c0_6], %6 {strides = array<i32>} : memref<1x4xf32, #tpu.memory_space<vmem>>, vector<1x4xf32>,
    %c0_7 = arith.constant 0 : index
    %c0_8 = arith.constant 0 : index
    %8 = vector.load %arg8[%c0_7, %c0_8] : memref<1x4xf32, #tpu.memory_space<vmem>>, vector<1x4xf32>
    %c0_9 = arith.constant 0 : index
    %c0_10 = arith.constant 0 : index
    %c0_11 = arith.constant 0 : index
    %9 = vector.load %arg3[%c0_9, %c0_10, %c0_11] : memref<1x4x16xf32, #tpu.memory_space<vmem>>, vector<1x4x16xf32>
    %cst_12 = arith.constant dense<0.000000e+00> : vector<1x4xf32>
    %10 = vector.multi_reduction <add>, %9, %cst_12 [2] : vector<1x4x16xf32> to vector<1x4xf32>
    %11 = arith.addf %8, %10 : vector<1x4xf32>
    %c0_13 = arith.constant 0 : index
    %c0_14 = arith.constant 0 : index
    %12 = vector.load %arg8[%c0_13, %c0_14] : memref<1x4xf32, #tpu.memory_space<vmem>>, vector<1x4xf32>
    tpu.vector_store %arg8[%c0_13, %c0_14], %11 {strides = array<i32>} : memref<1x4xf32, #tpu.memory_space<vmem>>, vector<1x4xf32>,
    %c0_i32_15 = arith.constant 0 : i32
    %13 = arith.cmpi eq, %arg1, %c0_i32_15 : i32
    %14 = arith.extui %13 : i1 to i32
    %c0_i32_16 = arith.constant 0 : i32
    %15 = arith.cmpi ne, %14, %c0_i32_16 : i32
    scf.if %15 {
      %c0_17 = arith.constant 0 : index
      %c0_18 = arith.constant 0 : index
      %16 = vector.load %arg7[%c0_17, %c0_18] : memref<1x4xf32, #tpu.memory_space<vmem>>, vector<1x4xf32>
      %cst_19 = arith.constant 6.250000e-02 : f32
      %17 = vector.broadcast %cst_19 : f32 to vector<1x4xf32>
      %18 = arith.mulf %16, %17 : vector<1x4xf32>
      %c0_20 = arith.constant 0 : index
      %c0_21 = arith.constant 0 : index
      %19 = vector.load %arg8[%c0_20, %c0_21] : memref<1x4xf32, #tpu.memory_space<vmem>>, vector<1x4xf32>
      %cst_22 = arith.constant 6.250000e-02 : f32
      %20 = vector.broadcast %cst_22 : f32 to vector<1x4xf32>
      %21 = arith.mulf %19, %20 : vector<1x4xf32>
      %c0_23 = arith.constant 0 : index
      %c0_24 = arith.constant 0 : index
      %c0_25 = arith.constant 0 : index
      %22 = vector.load %arg4[%c0_23, %c0_24, %c0_25] : memref<1x1x1xf32, #tpu.memory_space<vmem>>, vector<1x1x1xf32>
      %23 = vector.shape_cast %22 : vector<1x1x1xf32> to vector<1x1xf32>
      %cst_26 = arith.constant 0.785398185 : f32
      %24 = vector.broadcast %cst_26 : f32 to vector<1x1xf32>
      %25 = arith.mulf %23, %24 : vector<1x1xf32>
      %26 = math.cos %25 : vector<1x1xf32>
      %27 = math.sin %25 : vector<1x1xf32>
      %28 = vector.extract_strided_slice %18 {offsets = [0, 0], sizes = [1, 1], strides = [1, 1]} : vector<1x4xf32> to vector<1x1xf32>
      %29 = vector.extract_strided_slice %18 {offsets = [0, 1], sizes = [1, 1], strides = [1, 1]} : vector<1x4xf32> to vector<1x1xf32>
      %30 = vector.extract_strided_slice %18 {offsets = [0, 2], sizes = [1, 1], strides = [1, 1]} : vector<1x4xf32> to vector<1x1xf32>
      %31 = arith.mulf %26, %28 : vector<1x1xf32>
      %32 = arith.mulf %27, %29 : vector<1x1xf32>
      %33 = arith.subf %31, %32 : vector<1x1xf32>
      %34 = arith.mulf %27, %28 : vector<1x1xf32>
      %35 = arith.mulf %26, %29 : vector<1x1xf32>
      %36 = arith.addf %34, %35 : vector<1x1xf32>
      %37 = vector.extract_strided_slice %21 {offsets = [0, 0], sizes = [1, 1], strides = [1, 1]} : vector<1x4xf32> to vector<1x1xf32>
      %38 = vector.extract_strided_slice %21 {offsets = [0, 1], sizes = [1, 1], strides = [1, 1]} : vector<1x4xf32> to vector<1x1xf32>
      %39 = vector.extract_strided_slice %21 {offsets = [0, 2], sizes = [1, 1], strides = [1, 1]} : vector<1x4xf32> to vector<1x1xf32>
      %c0_27 = arith.constant 0 : index
      %c0_28 = arith.constant 0 : index
      %40 = memref.load %arg5[%c0_27, %c0_28] : memref<3x6xf32, #tpu.memory_space<smem>>
      %41 = vector.broadcast %40 : f32 to vector<1x1xf32>
      %42 = arith.mulf %33, %41 : vector<1x1xf32>
      %c0_29 = arith.constant 0 : index
      %c1 = arith.constant 1 : index
      %43 = memref.load %arg5[%c0_29, %c1] : memref<3x6xf32, #tpu.memory_space<smem>>
      %44 = vector.broadcast %43 : f32 to vector<1x1xf32>
      %45 = arith.mulf %36, %44 : vector<1x1xf32>
      %46 = arith.addf %42, %45 : vector<1x1xf32>
      %c0_30 = arith.constant 0 : index
      %c2 = arith.constant 2 : index
      %47 = memref.load %arg5[%c0_30, %c2] : memref<3x6xf32, #tpu.memory_space<smem>>
      %48 = vector.broadcast %47 : f32 to vector<1x1xf32>
      %49 = arith.mulf %30, %48 : vector<1x1xf32>
      %50 = arith.addf %46, %49 : vector<1x1xf32>
      %c0_31 = arith.constant 0 : index
      %c3 = arith.constant 3 : index
      %51 = memref.load %arg5[%c0_31, %c3] : memref<3x6xf32, #tpu.memory_space<smem>>
      %52 = vector.broadcast %51 : f32 to vector<1x1xf32>
      %53 = arith.mulf %37, %52 : vector<1x1xf32>
      %54 = arith.addf %50, %53 : vector<1x1xf32>
      %c0_32 = arith.constant 0 : index
      %c4 = arith.constant 4 : index
      %55 = memref.load %arg5[%c0_32, %c4] : memref<3x6xf32, #tpu.memory_space<smem>>
      %56 = vector.broadcast %55 : f32 to vector<1x1xf32>
      %57 = arith.mulf %38, %56 : vector<1x1xf32>
      %58 = arith.addf %54, %57 : vector<1x1xf32>
      %c0_33 = arith.constant 0 : index
      %c5 = arith.constant 5 : index
      %59 = memref.load %arg5[%c0_33, %c5] : memref<3x6xf32, #tpu.memory_space<smem>>
      %60 = vector.broadcast %59 : f32 to vector<1x1xf32>
      %61 = arith.mulf %39, %60 : vector<1x1xf32>
      %62 = arith.addf %58, %61 : vector<1x1xf32>
      %c1_34 = arith.constant 1 : index
      %c0_35 = arith.constant 0 : index
      %63 = memref.load %arg5[%c1_34, %c0_35] : memref<3x6xf32, #tpu.memory_space<smem>>
      %64 = vector.broadcast %63 : f32 to vector<1x1xf32>
      %65 = arith.mulf %33, %64 : vector<1x1xf32>
      %c1_36 = arith.constant 1 : index
      %c1_37 = arith.constant 1 : index
      %66 = memref.load %arg5[%c1_36, %c1_37] : memref<3x6xf32, #tpu.memory_space<smem>>
      %67 = vector.broadcast %66 : f32 to vector<1x1xf32>
      %68 = arith.mulf %36, %67 : vector<1x1xf32>
      %69 = arith.addf %65, %68 : vector<1x1xf32>
      %c1_38 = arith.constant 1 : index
      %c2_39 = arith.constant 2 : index
      %70 = memref.load %arg5[%c1_38, %c2_39] : memref<3x6xf32, #tpu.memory_space<smem>>
      %71 = vector.broadcast %70 : f32 to vector<1x1xf32>
      %72 = arith.mulf %30, %71 : vector<1x1xf32>
      %73 = arith.addf %69, %72 : vector<1x1xf32>
      %c1_40 = arith.constant 1 : index
      %c3_41 = arith.constant 3 : index
      %74 = memref.load %arg5[%c1_40, %c3_41] : memref<3x6xf32, #tpu.memory_space<smem>>
      %75 = vector.broadcast %74 : f32 to vector<1x1xf32>
      %76 = arith.mulf %37, %75 : vector<1x1xf32>
      %77 = arith.addf %73, %76 : vector<1x1xf32>
      %c1_42 = arith.constant 1 : index
      %c4_43 = arith.constant 4 : index
      %78 = memref.load %arg5[%c1_42, %c4_43] : memref<3x6xf32, #tpu.memory_space<smem>>
      %79 = vector.broadcast %78 : f32 to vector<1x1xf32>
      %80 = arith.mulf %38, %79 : vector<1x1xf32>
      %81 = arith.addf %77, %80 : vector<1x1xf32>
      %c1_44 = arith.constant 1 : index
      %c5_45 = arith.constant 5 : index
      %82 = memref.load %arg5[%c1_44, %c5_45] : memref<3x6xf32, #tpu.memory_space<smem>>
      %83 = vector.broadcast %82 : f32 to vector<1x1xf32>
      %84 = arith.mulf %39, %83 : vector<1x1xf32>
      %85 = arith.addf %81, %84 : vector<1x1xf32>
      %c2_46 = arith.constant 2 : index
      %c0_47 = arith.constant 0 : index
      %86 = memref.load %arg5[%c2_46, %c0_47] : memref<3x6xf32, #tpu.memory_space<smem>>
      %87 = vector.broadcast %86 : f32 to vector<1x1xf32>
      %88 = arith.mulf %33, %87 : vector<1x1xf32>
      %c2_48 = arith.constant 2 : index
      %c1_49 = arith.constant 1 : index
      %89 = memref.load %arg5[%c2_48, %c1_49] : memref<3x6xf32, #tpu.memory_space<smem>>
      %90 = vector.broadcast %89 : f32 to vector<1x1xf32>
      %91 = arith.mulf %36, %90 : vector<1x1xf32>
      %92 = arith.addf %88, %91 : vector<1x1xf32>
      %c2_50 = arith.constant 2 : index
      %c2_51 = arith.constant 2 : index
      %93 = memref.load %arg5[%c2_50, %c2_51] : memref<3x6xf32, #tpu.memory_space<smem>>
      %94 = vector.broadcast %93 : f32 to vector<1x1xf32>
      %95 = arith.mulf %30, %94 : vector<1x1xf32>
      %96 = arith.addf %92, %95 : vector<1x1xf32>
      %c2_52 = arith.constant 2 : index
      %c3_53 = arith.constant 3 : index
      %97 = memref.load %arg5[%c2_52, %c3_53] : memref<3x6xf32, #tpu.memory_space<smem>>
      %98 = vector.broadcast %97 : f32 to vector<1x1xf32>
      %99 = arith.mulf %37, %98 : vector<1x1xf32>
      %100 = arith.addf %96, %99 : vector<1x1xf32>
      %c2_54 = arith.constant 2 : index
      %c4_55 = arith.constant 4 : index
      %101 = memref.load %arg5[%c2_54, %c4_55] : memref<3x6xf32, #tpu.memory_space<smem>>
      %102 = vector.broadcast %101 : f32 to vector<1x1xf32>
      %103 = arith.mulf %38, %102 : vector<1x1xf32>
      %104 = arith.addf %100, %103 : vector<1x1xf32>
      %c2_56 = arith.constant 2 : index
      %c5_57 = arith.constant 5 : index
      %105 = memref.load %arg5[%c2_56, %c5_57] : memref<3x6xf32, #tpu.memory_space<smem>>
      %106 = vector.broadcast %105 : f32 to vector<1x1xf32>
      %107 = arith.mulf %39, %106 : vector<1x1xf32>
      %108 = arith.addf %104, %107 : vector<1x1xf32>
      %109 = tpu.concatenate %62, %85, %108 in 1 : vector<1x1xf32>, vector<1x1xf32>, vector<1x1xf32> -> vector<1x3xf32>
      %c0_58 = arith.constant 0 : index
      %c0_59 = arith.constant 0 : index
      %c0_60 = arith.constant 0 : index
      %110 = vector.load %arg6[%c0_58, %c0_59, %c0_60] : memref<1x1x3xf32, #tpu.memory_space<vmem>>, vector<1x1x3xf32>
      %111 = vector.shape_cast %110 : vector<1x1x3xf32> to vector<1x3xf32>
      %112 = vector.shape_cast %109 : vector<1x3xf32> to vector<1x1x3xf32>
      tpu.vector_store %arg6[%c0_58, %c0_59, %c0_60], %112 {strides = array<i32>} : memref<1x1x3xf32, #tpu.memory_space<vmem>>, vector<1x1x3xf32>,
    } else {
    }
    return
  }
  func.func @transform_0(%arg0: i32, %arg1: i32) -> (i32, i32, i32) {
    %c0_i32 = arith.constant 0 : i32
    %c0_i32_0 = arith.constant 0 : i32
    return %arg0, %c0_i32, %arg1 : i32, i32, i32
  }
  func.func @transform_1(%arg0: i32, %arg1: i32) -> (i32, i32, i32) {
    %c0_i32 = arith.constant 0 : i32
    %c0_i32_0 = arith.constant 0 : i32
    return %arg0, %c0_i32, %arg1 : i32, i32, i32
  }
  func.func @transform_2(%arg0: i32, %arg1: i32) -> (i32, i32, i32) {
    %c0_i32 = arith.constant 0 : i32
    %c0_i32_0 = arith.constant 0 : i32
    %c0_i32_1 = arith.constant 0 : i32
    return %arg0, %c0_i32, %c0_i32_0 : i32, i32, i32
  }
  func.func @transform_3(%arg0: i32, %arg1: i32) -> (i32, i32) {
    %c0_i32 = arith.constant 0 : i32
    %c0_i32_0 = arith.constant 0 : i32
    %c0_i32_1 = arith.constant 0 : i32
    return %c0_i32, %c0_i32_0 : i32, i32
  }
  func.func @transform_4(%arg0: i32, %arg1: i32) -> (i32, i32, i32) {
    %c0_i32 = arith.constant 0 : i32
    %c0_i32_0 = arith.constant 0 : i32
    %c0_i32_1 = arith.constant 0 : i32
    return %arg0, %c0_i32, %c0_i32_0 : i32, i32, i32
  }
}

</mosaic_0001>

<bundles_post_ra>
// kernel: tpu_custom_call.1
= control target key start
LH: loop header
LB: loop body
LE: loop exit
PB: predicated region body
PF: predicated region fallthrough
CT: control target
= control target key end

     0   :  { %s1535_s0 = inlined_call_operand.hbm [shape: f32[2,4,16], index: 0, kind: input, shape index: {}]   ;;  %s1536_s1 = inlined_call_operand.hbm [shape: f32[2,4,16], index: 1, kind: input, shape index: {}]   ;;  %s1537_s2 = inlined_call_operand.vmem [shape: f32[2,1,1], index: 2, kind: input, shape index: {}]   ;;  %s1538_s3 = inlined_call_operand.hbm [shape: f32[3,6], index: 3, kind: input, shape index: {}]   ;;  %s1539_s4 = inlined_call_operand.hbm [shape: f32[2,1,3], index: 4, kind: output, shape index: {}]  }
   0x1   :  { %1542 = sst [smem:[#allocation18_spill]] %s1538_s3 }
   0x2   :  { %9 = vsyncpa [#allocation5], 0 }
   0x3   :  { %11 = vsyncpa [#allocation5 + $0x1], 0 }
   0x4   :  { %12 = vsyncpa [#allocation9], 0 }
   0x5   :  { %14 = vsyncpa [#allocation9 + $0x1], 0 }
   0x6   :  { %15 = vsyncpa [#allocation7], 0 }
   0x7   :  { %16 = vsyncpa [#allocation6], 0 }
   0x8   :  { %18 = vsyncpa [#allocation6 + $0x1], 0  ;;  %s1277_s15 = smov 0   ;;  %s1279_s16 = smov 0  }
   0x9   :  { %s1281_s17 = smov 0   ;;  %s1283_s18 = smov 0  }
   0xa   :  { %s1285_s19 = smov 0   ;;  %s1287_s20 = smov 0  }
   0xb LB: > { %1543 = sst [smem:[#allocation16_spill]] %s1233_s19  ;;  %s942_s21 = sadd.s32 4294967295, %s1237_s20   ;;  %s1237_s20 = sphi %s1287_s20, %s24_s20   ;;  %s1233_s19 = sphi %s1285_s19, %s1554_s19   ;;  %s1229_s18 = sphi %s1283_s18, %s1553_s18   ;;  %s1225_s17 = sphi %s1281_s17, %s1557_s17   ;;  %s1221_s16 = sphi %s1279_s16, %s1556_s16   ;;  %s1217_s15 = sphi %s1277_s15, %s1555_s15  }
   0xc   : > { %s943_s22 = sadd.s32 4294967294, %s1237_s20   ;;  %p58_p0 = scmp.ne.s32.totalorder %s1221_s16, %s1217_s15 }
   0xd   : > { %p1311_p1 = scmp.eq.s32.totalorder %s942_s21, 0  ;;  %p1315_p2 = scmp.eq.s32.totalorder %s942_s21, 1 }
   0xe   : > { %p163_p3 = scmp.eq.s32.totalorder %s943_s22, 1  ;;  %p944_p5 = scmp.ge.s32.totalorder %s1237_s20, 1 }
   0xf   : > { %p1321_p4 = por %p1311_p1, %p58_p0  ;;  %p170_p7 = scmp.lt.s32.totalorder %s1237_s20, 3 }
  0x10   : > { %p1326_p6 = por %p163_p3, %p58_p0  ;;  %s1548_s3 = sld [smem:[#allocation18_spill]] }
  0x11   : > { %p1334_p8 = pnand %p944_p5, %p170_p7  ;;  %s36_s5 = sadd.s32 1, %s1233_s19 }
  0x12   : > { %s45_s6 = sadd.s32 1, %s1225_s17  ;;  %p38_p12 = scmp.ge.s32.totalorder %s36_s5, 2 }
  0x13   : > { %p990_p10 = pneg %p1334_p8  ;;  %s1239_s7 = smov [#allocation10]  }
  0x14   : > { %s1559_s5 = smov (%p38_p12, %s36_s5), 0  ;;  %p52_p13 = scmp.ne.s32.totalorder %s1225_s17, %s1221_s16 }
  0x15   : > { %p991_p11 = pnand %p990_p10, %p1311_p1  ;;  %1550 = sst [smem:[#allocation17_spill]] %s1559_s5 }
  0x16   : > { %s182_s29 = sshll.u32 %s1548_s3, 4  ;;  %p53_p0 = scmp.eq.s32.totalorder %s1237_s20, 0  ;;  %s183_s29 = int_to_ptr.hbm [resolvable:$true] %s182_s29 }
  0x17   : > { %993 = dma.hbm_to_smem (!%p991_p11), %s183_s29, 64, %s1239_s7, [#allocation7]  }
  0x18   : > { %s40_s8 = ssub.s32 %s1233_s19, %s1559_s5  ;;  %p1006_p3 = scmp.lt.s32.totalorder %s1237_s20, 2 }
  0x19   : > { %p43_p5 = scmp.eq.s32.totalorder %s40_s8, 0  ;;  %p54_p7 = por %p53_p0, %p52_p13 }
  0x1a   : > { %p1355_p9 = por %p1315_p2, %p52_p13  ;;  %s193_s10 = sand.u32 1, %s1225_s17  }
  0x1b   : > { %s1361_s11 = scalar_select %p43_p5, %s1225_s17, %s45_s6  }
  0x1c   : > { %s947_s12 = sshll.u32 %s193_s10, 2  ;;  %s948_s13 = sshll.u32 %s1233_s19, 2 }
  0x1d   : > { %s202_s22 = scalar_lea.hbm %s1535_s0, %s948_s13  ;;  %s197_s27 = scalar_lea.vmem [#allocation4], %s947_s12 }
  0x1e   : > { %s206_s28 = sshll.u32 %s197_s27, 4  ;;  %s204_s29 = sshll.u32 %s202_s22, 4  ;;  %s207_s28 = int_to_ptr.vmem [resolvable:$true] %s206_s28  ;;  %s205_s29 = int_to_ptr.hbm [resolvable:$true] %s204_s29 }
  0x1f   : > { %p995_p10 = pnand %p1006_p3, %p54_p7  ;;  %s222_s8 = scalar_lea.hbm %s1536_s1, %s948_s13 }
  0x20   : > { %s194_s3 = scalar_lea.sflag [#allocation5], %s193_s10  ;;  %s224_s6 = sshll.u32 %s222_s8, 4  ;;  %s225_s6 = int_to_ptr.hbm [resolvable:$true] %s224_s6 }
  0x21   : > { %997 = dma.hbm_to_vmem [thread:$0]  (!%p995_p10), %s205_s29, 64, %s207_s28, %s194_s3  }
  0x22   : > { %s217_s5 = scalar_lea.vmem [#allocation8], %s947_s12  ;;  %s214_s14 = scalar_lea.sflag [#allocation9], %s193_s10 }
  0x23   : > { %s226_s19 = sshll.u32 %s217_s5, 4  ;;  %241 = sbr.rel (%p1334_p8) target bundleno = 567 (0x237), region = 36  ;;  %s227_s19 = int_to_ptr.vmem [resolvable:$true] %s226_s19 }
  0x24   : > { %1000 = dma.hbm_to_vmem [thread:$0]  (!%p995_p10), %s225_s6, 64, %s227_s19, %s214_s14  }
  0x25   : > { %s1375_s21 = sand.u32 (!%p1334_p8), 1, %s1221_s16  }
  0x26   : > { %s952_s22 = sshll.u32 (!%p1334_p8), %s1375_s21, 2  ;;  %s244_s13 = scalar_lea.sflag (!%p1334_p8), [#allocation5], %s1375_s21 }
  0x27   : > { %s247_s27 = scalar_lea.vmem (!%p1334_p8), [#allocation4], %s952_s22 }
  0x28   : > { %1200 = dma.done.wait (%p1321_p4), %s244_s13, 64  }
  0x29   : > { %1202 = vsyncadd (%p1321_p4), %s244_s13, 4294967232  ;;  %s254_s3 = scalar_lea.sflag [#allocation9], %s1375_s21  ;;  %s257_s19 = scalar_lea.vmem [#allocation8], %s952_s22 }
  0x2a   : > { %1204 = dma.done.wait (%p1321_p4), %s254_s3, 64  }
  0x2b   : > { %1206 = vsyncadd (%p1321_p4), %s254_s3, 4294967232 }
  0x2c   : > { %1208 = dma.done.wait (%p1311_p1), [#allocation7], 64  }
  0x2d   : > { %1210 = vsyncadd (%p1311_p1), [#allocation7], 4294967232 }
  0x2e   : > { %268 = sfence }
  0x2f   : > { %v307_v0 = vld [vmem:[%s247_s27] sm:$0xf]  ;;  %vm308_vm0 = vcmask 125952   ;;  %v336_v2 = vld [vmem:[%s257_s19] sm:$0xf]  ;;  %v1240_v4 = vmov 0  }
  0x30   : > { %v309_v1 = vsel %vm308_vm0, %v307_v0, 0.0  ;;  %v337_v3 = vsel %vm308_vm0, %v336_v2, 0.0  ;;  %1070 = vset.pattern.permute.xlu1 %v1240_v4  ;;  %1071 = vset.pattern.permute.xlu0 %v1240_v4  ;;  %p296_p1 = scmp.lt.s32.totalorder %s1229_s18, 1  ;;  %v1241_v26 = vmov 2102212464   ;;  %vm303_vm10 = vcmask 24576  }
  0x31   : > { %310 = vadd.xlane.f32.xlu0 %v309_v1  ;;  %v1242_v28 = vmov 920167782   ;;  %v1243_v33 = vmov 1326507024   ;;  %v1244_v35 = vmov 683565275  }
  0x32   : > { %s297_s23 = scalar_select %p296_p1, %s1229_s18, 1  ;;  %v1245_v37 = vmov 2475754826   ;;  %v1246_v40 = vmov 2131351028  }
  0x33   : > { %s974_s10 = sld [smem:[#allocation10 + $0x102]]  ;;  %s1248_s29 = smov 127  }
  0x34   : > { %s298_s5 = scalar_lea.vmem %s1537_s2, %s297_s23  ;;  %s968_s12 = sld [smem:[#allocation10 + $0x82]] }
  0x35   : > { %v367_v16 = vld [vmem:[%s298_s5] sm:$0x1]  ;;  %s970_s28 = sld [smem:[#allocation10 + $0x84]]  ;;  %s1249_s7 = smov 126  }
  0x36   : > { %v1399_v17 = vmul.f32 0.7853982, %v367_v16  ;;  %s965_s24 = sld [smem:[#allocation10 + $0x5]] }
  0x37   : > { %s976_s8 = sld [smem:[#allocation10 + $0x104]] }
  0x38   : > { %v372_v19 = vand.u32 2139095040, %v1399_v17  ;;  %v369_v30 = vand.u32 2147483647, %v1399_v17  ;;  %s971_s6 = sld [smem:[#allocation10 + $0x85]]  ;;  %vm371_vm14 = vcmp.lt.s32.totalorder %v1399_v17, 0 }
  0x39   : > { %338 = vadd.xlane.f32.xlu0 %v337_v3  ;;  %s977_s14 = sld [smem:[#allocation10 + $0x105]] }
  0x3a   : > { %v373_v20 = vshrl.u32 %v372_v19, 23  ;;  %v376_v45 = vand.u32 8388607, %v369_v30  ;;  %s962_s22 = sld [smem:[#allocation10 + $0x2]]  ;;  %vm370_vm15 = vcmp.le.f32.partialorder %v369_v30, 0.7853982 }
  0x3b   : > { %s964_s13 = sld [smem:[#allocation10 + $0x4]] }
  0x3c   : > { %v955_v21 = vadd.s32 4294967169, %v373_v20  ;;  %v377_v51 = vor.u32 8388608, %v376_v45  ;;  %s966_s27 = sld [smem:[#allocation10 + $0x80]] }
  0x3d   : > { %s967_s3 = sld [smem:[#allocation10 + $0x81]] }
  0x3e   : > { %v379_v22 = vadd.s32 1, %v955_v21  ;;  %v417_v57 = vshll.u32 %v377_v51, 8  ;;  %s688_s19 = sld [smem:[#allocation10]] }
  0x3f   : > { %s961_s23 = sld [smem:[#allocation10 + $0x1]] }
  0x40   : > { %vm380_vm1 = vcmp.gt.s32.totalorder %v379_v22, 0  ;;  %v418_v60 = vand.u32 65535, %v417_v57  ;;  %v419_v63 = vshrl.u32 %v417_v57, 16  ;;  %s969_s25 = sld [smem:[#allocation10 + $0x83]] }
  0x41   : > { %v381_v23 = vsel %vm380_vm1, %v379_v22, 0  ;;  %s972_s30 = sld [smem:[#allocation10 + $0x100]] }
  0x42   : > { %v383_v24 = vand.u32 31, %v381_v23  ;;  %v1406_v31 = vshrl.u32 %v381_v23, 5  ;;  %s973_s5 = sld [smem:[#allocation10 + $0x101]] }
  0x44   : > { %v1402_v25 = vsub.s32 32, %v383_v24  ;;  %v395_v27 = vshll.u32 %v1241_v26, %v383_v24  ;;  %v398_v32 = vshll.u32 %v1242_v28, %v383_v24  ;;  %v386_v36 = vshll.u32 %v1244_v35, %v383_v24 }
  0x45   : > { %v389_v39 = vshll.u32 %v1245_v37, %v383_v24  ;;  %v392_v42 = vshll.u32 %v1246_v40, %v383_v24  ;;  %vm404_vm2 = vcmp.lt.s32.totalorder %v1406_v31, 4  ;;  %vm401_vm3 = vcmp.lt.s32.totalorder %v1406_v31, 1 }
  0x46   : > { %v396_v29 = vshrl.u32 %v1242_v28, %v1402_v25  ;;  %v399_v34 = vshrl.u32 %v1243_v33, %v1402_v25  ;;  %v387_v38 = vshrl.u32 %v1245_v37, %v1402_v25  ;;  %v390_v41 = vshrl.u32 %v1246_v40, %v1402_v25 }
  0x47   : > { %v393_v43 = vshrl.u32 %v1241_v26, %v1402_v25  ;;  %vm403_vm4 = vcmp.lt.s32.totalorder %v1406_v31, 3  ;;  %vm402_vm5 = vcmp.lt.s32.totalorder %v1406_v31, 2  ;;  %v1247_v24 = vmov 0.0  }
  0x48   : > { %v397_v44 = vor.u32 %v396_v29, %v395_v27  ;;  %v400_v46 = vor.u32 %v399_v34, %v398_v32  ;;  %v388_v47 = vor.u32 %v387_v38, %v386_v36  ;;  %v391_v48 = vor.u32 %v390_v41, %v389_v39  ;;  %304 = vst.msk [vmem:[#allocation2] sm:$0x1] %vm303_vm10, %v1247_v24 }
  0x49   : > { %v394_v49 = vor.u32 %v393_v43, %v392_v42  ;;  %305 = vst.msk [vmem:[#allocation3] sm:$0x1] %vm303_vm10, %v1247_v24  ;;  %v385_v34 = vshrl.u32 %v1244_v35, %v1402_v25 }
  0x4a   : > { %v410_v50 = vsel %vm404_vm2, %v397_v44, 920167782  ;;  %v414_v52 = vsel %vm404_vm2, %v400_v46, 1326507024  ;;  %v409_v53 = vsel %vm401_vm3, %v388_v47, %v391_v48 }
  0x4b   : > { %v411_v54 = vsel %vm403_vm4, %v394_v49, %v410_v50  ;;  %v413_v55 = vsel %vm401_vm3, %v391_v48, %v394_v49  ;;  %v415_v56 = vsel %vm403_vm4, %v397_v44, %v414_v52  ;;  %v406_v38 = vsel %vm404_vm2, %v394_v49, 2102212464 }
  0x4c   : > { %v412_v58 = vsel %vm402_vm5, %v409_v53, %v411_v54  ;;  %v416_v59 = vsel %vm402_vm5, %v413_v55, %v415_v56  ;;  %v405_v39 = vsel %vm401_vm3, %v385_v34, %v388_v47  ;;  %v407_v40 = vsel %vm403_vm4, %v391_v48, %v406_v38 }
  0x4d   : > { %v443_v61 = vshrl.u32 %v412_v58, 16  ;;  %v421_v62 = vshrl.u32 %v416_v59, 16  ;;  %v442_v0 = vand.u32 65535, %v412_v58  ;;  %v420_v2 = vand.u32 65535, %v416_v59 }
  0x4e   : > { %v408_v43 = vsel %vm402_vm5, %v405_v39, %v407_v40  ;;  %v328_v49 = vlaneseq  ;;  %v708_v34 = vstv %s964_s13  ;;  %s810_s13 = scalar_lea.sflag [#allocation6], %s1375_s21 }
  0x4f   : > { %v445_v1 = vmul.u32 %v443_v61, %v418_v60  ;;  %v423_v3 = vmul.u32 %v421_v62, %v418_v60  ;;  %v425_v16 = vmul.u32 %v421_v62, %v419_v63  ;;  %v462_v25 = vmul.u32 %v417_v57, %v408_v43  ;;  %v306_v52 = vld [vmem:[#allocation2] sm:$0x1] }
  0x50   : > { %v329_v47 = vand.u32 127, %v328_v49  ;;  %v335_v58 = vld [vmem:[#allocation3] sm:$0x1] }
  0x51   : > { %v449_v26 = vshrl.u32 %v445_v1, 16  ;;  %v427_v28 = vshrl.u32 %v423_v3, 16 }
  0xa4   : > { %v311_v5 = vpop.xlane.xlu0 %310 }
  0xa5   : > { %v313_v6 = vperm.slane %v311_v5, 0  ;;  %v314_v7 = vperm.slane %v311_v5, 1  ;;  %v315_v8 = vperm.slane %v311_v5, 2  ;;  %v316_v9 = vperm.slane %v311_v5, 3 }
  0xa6   : > { %v444_v5 = vmul.u32 %v442_v0, %v418_v60 }
  0xa7   : > { %317 = vst [vmem:[#allocation1] ss:$9 sm:$0xff] %v313_v6  ;;  %v446_v6 = vmul.u32 %v442_v0, %v419_v63 }
  0xa8   : > { %319 = vst [vmem:[#allocation1 + $0x1] ss:$9 sm:$0xff] %v314_v7  ;;  %v448_v7 = vshll.u32 %v445_v1, 16 }
  0xa9   : > { %321 = vst [vmem:[#allocation1 + $0x2] ss:$9 sm:$0xff] %v315_v8  ;;  %v422_v8 = vmul.u32 %v420_v2, %v418_v60  ;;  %v451_v32 = vshrl.u32 %v446_v6, 16 }
  0xaa   : > { %323 = vst [vmem:[#allocation1 + $0x3] ss:$9 sm:$0xff] %v316_v9  ;;  %v424_v9 = vmul.u32 %v420_v2, %v419_v63  ;;  %vm452_vm6 = vc.u32 %v444_v5, %v448_v7 }
  0xac   : > { %v339_v10 = vpop.xlane.xlu0 %338  ;;  %v429_v36 = vshrl.u32 %v424_v9, 16 }
  0xad   : > { %v341_v11 = vperm.slane %v339_v10, 0  ;;  %v342_v12 = vperm.slane %v339_v10, 1  ;;  %v343_v13 = vperm.slane %v339_v10, 2  ;;  %v344_v14 = vperm.slane %v339_v10, 3 }
  0xae   : > { %v426_v10 = vshll.u32 %v423_v3, 16  ;;  %v731_v3 = vstv %s968_s12  ;;  %s1250_s12 = smov 2  }
  0xb0   : > { %vm430_vm7 = vc.u32 %v422_v8, %v426_v10 }
  0xb1   : > { %v324_v15 = vld [vmem:[#allocation1] sm:$0xff]  ;;  %v431_v19 = vsel %vm430_vm7, 1, %v1240_v4  ;;  %vm803_vm7 = vcmask 7168  }
  0xb2   : > { %326 = vperm.xlu1 %1070, %v324_v15   ;;  %345 = vst [vmem:[#allocation1] ss:$9 sm:$0xff] %v341_v11  ;;  %v450_v11 = vshll.u32 %v446_v6, 16  ;;  %v447_v15 = vmul.u32 %v443_v61, %v419_v63  ;;  %v433_v21 = vadd.s32 %v431_v19, %v425_v16  ;;  %v766_v61 = vstv %s974_s10  ;;  %s975_s10 = sld [smem:[#allocation10 + $0x103]] }
  0xb3   : > { %347 = vst [vmem:[#allocation1 + $0x1] ss:$9 sm:$0xff] %v342_v12  ;;  %v454_v12 = vadd.s32 %v448_v7, %v444_v5  ;;  %v743_v7 = vstv %s970_s28  ;;  %v751_v16 = vstv %s971_s6  ;;  %s963_s28 = sld [smem:[#allocation10 + $0x3]]  ;;  %s295_s6 = scalar_lea.vmem [#allocation11], %s1375_s21 }
  0xb4   : > { %349 = vst [vmem:[#allocation1 + $0x2] ss:$9 sm:$0xff] %v343_v13  ;;  %v428_v13 = vshll.u32 %v424_v9, 16 }
  0xb5   : > { %351 = vst [vmem:[#allocation1 + $0x3] ss:$9 sm:$0xff] %v344_v14  ;;  %v432_v14 = vadd.s32 %v426_v10, %v422_v8  ;;  %vm456_vm8 = vc.u32 %v454_v12, %v450_v11  ;;  %v458_v42 = vadd.s32 %v454_v12, %v450_v11  ;;  %v716_v8 = vstv %s965_s24 }
  0xb6   : > { %v457_v22 = vsel %vm456_vm8, 1, %v1240_v4  ;;  %vm805_vm8 = vcmask 15360  }
  0xb7   : > { %vm434_vm9 = vc.u32 %v432_v14, %v428_v13  ;;  %v778_v13 = vstv %s976_s8  ;;  %s818_s8 = scalar_lea.hbm %s1539_s4, %s1229_s18 }
  0xb8   : > { %v435_v23 = vsel %vm434_vm9, 1, %v1240_v4  ;;  %vm807_vm9 = vcmask 16384  }
  0xb9   : > { %v437_v29 = vadd.s32 %v435_v23, %v433_v21 }
  0xbb   : > { %v438_v37 = vadd.s32 %v437_v29, %v427_v28  ;;  %v696_v28 = vstv %s962_s22  ;;  %s822_s22 = sshll.u32 %s818_s8, 4  ;;  %s823_s22 = int_to_ptr.hbm [resolvable:$true] %s822_s22 }
  0xbc   : > { %v352_v18 = vld [vmem:[#allocation1] sm:$0xff] }
  0xbd   : > { %354 = vperm.xlu1 %1070, %v352_v18   ;;  %v453_v18 = vsel %vm452_vm6, 1, %v1240_v4  ;;  %v1449_v41 = vadd.s32 %v438_v37, %v429_v36  ;;  %vm512_vm6 = vweird.f32 %v1399_v17 }
  0xbe   : > { %v455_v20 = vadd.s32 %v453_v18, %v447_v15 }
  0xbf   : > { %vm464_vm11 = vc.u32 %v1449_v41, %v458_v42  ;;  %v463_v18 = vadd.s32 %v458_v42, %v1449_v41 }
  0xc0   : > { %v459_v27 = vadd.s32 %v457_v22, %v455_v20  ;;  %v786_v22 = vstv %s977_s14  ;;  %s820_s14 = sshll.u32 %s295_s6, 4  ;;  %s821_s14 = int_to_ptr.vmem [resolvable:$true] %s820_s14 }
  0xc2   : > { %v460_v33 = vadd.s32 %v459_v27, %v449_v26 }
  0xc4   : > { %v461_v4 = vadd.s32 %v460_v33, %v451_v32 }
  0xc6   : > { %v465_v44 = vadd.s32 1, %v461_v4 }
  0xc8   : > { %v466_v35 = vsel %vm464_vm11, %v465_v44, %v461_v4 }
  0xc9   : > { %v467_v45 = vadd.s32 %v466_v35, %v462_v25 }
  0xcb   : > { %v468_v46 = vadd.s32 536870912, %v467_v45 }
  0xcd   : > { %v1454_v50 = vshrl.u32 %v468_v46, 30 }
  0xcf   : > { %v470_v51 = vshll.u32 %v1454_v50, 30  ;;  %v493_v46 = vsub.s32 4, %v1454_v50 }
  0xd1   : > { %v471_v54 = vsub.s32 %v467_v45, %v470_v51  ;;  %v494_v51 = vsel %vm371_vm14, %v493_v46, %v1454_v50 }
  0xd3   : > { %v473_v31 = vsub.s32 0, %v471_v54  ;;  %vm472_vm12 = vcmp.lt.s32.totalorder %v471_v54, 0 }
  0xd5   : > { %v474_v56 = vsel %vm472_vm12, %v473_v31, %v471_v54 }
  0xd6   : > { %v475_v63 = vclz %v474_v56 }
  0xd8   : > { %v956_v2 = vadd.s32 4294967294, %v475_v63 }
  0xda   : > { %vm957_vm13 = vcmp.lt.s32.totalorder %v956_v2, 0 }
  0xdb   : > { %v478_v10 = vsel %vm957_vm13, 0, %v956_v2 }
  0xdc   : > { %v483_v14 = vsub.s32 4294967266, %v478_v10  ;;  %v479_v19 = vsub.s32 32, %v478_v10  ;;  %v480_v23 = vshll.u32 %v471_v54, %v478_v10 }
  0xde   : > { %v484_v20 = vadd.s32 127, %v483_v14  ;;  %v481_v24 = vshrl.u32 %v463_v18, %v479_v19  ;;  %v692_v18 = vstv %s961_s23  ;;  %s1167_s23 = scalar_lea.hbm %s1539_s4, 2 }
  0xe0   : > { %v485_v26 = vshll.u32 %v484_v20, 23  ;;  %v482_v29 = vor.u32 %v481_v24, %v480_v23  ;;  %v739_v20 = vstv %s969_s25 }
  0xe2   : > { %v486_v32 = vor.u32 4788187, %v485_v26  ;;  %v489_v37 = vcvt.s32.f32 %v482_v29  ;;  %v759_v29 = vstv %s972_s30 }
  0xe4   : > { %v487_v36 = vand.u32 2147483647, %v486_v32  ;;  %v762_v32 = vstv %s973_s5 }
  0xe6   : > { %v490_v4 = vmul.f32 %v489_v37, %v487_v36  ;;  %v774_v37 = vstv %s975_s10 }
  0xe8   : > { %v491_v39 = vxor.u32 2147483648, %v490_v4 }
  0xea   : > { %v492_v40 = vsel %vm371_vm14, %v491_v39, %v490_v4 }
  0xeb   : > { %v495_v41 = vsel %vm370_vm15, %v1399_v17, %v492_v40 }
  0xec   : > { %v497_v42 = vmul.f32 %v495_v41, %v495_v41 }
  0xee   : > { %v505_v43 = vmul.f32 -0.00019511016, %v497_v42  ;;  %v498_v44 = vmul.f32 -0.001358992, %v497_v42 }
  0xf0   : > { %v506_v25 = vadd.f32 0.008332121, %v505_v43  ;;  %v499_v35 = vadd.f32 0.041655596, %v498_v44 }
  0xf2   : > { %v507_v45 = vmul.f32 %v506_v25, %v497_v42  ;;  %v500_v49 = vmul.f32 %v499_v35, %v497_v42 }
 0x124   : > { %v327_v48 = vpop.permute.xlu1 %326 }
 0x125   : > { %v330_v53 = vperm.slane %v327_v48, %v329_v47  ;;  %v501_v48 = vadd.f32 -0.4999988, %v500_v49 }
 0x127   : > { %v332_v55 = vadd.f32 %v330_v53, %v306_v52  ;;  %v496_v53 = vsel %vm370_vm15, 0, %v494_v51  ;;  %v502_v54 = vmul.f32 %v501_v48, %v497_v42  ;;  %v704_v51 = vstv %s963_s28 }
 0x129   : > { %334 = vst.msk [vmem:[#allocation2] sm:$0x1] %vm303_vm10, %v332_v55  ;;  %v667_v55 = vadd.s32 3, %v496_v53  ;;  %v503_v31 = vadd.f32 1.0, %v502_v54 }
 0x12f   : > { %v355_v57 = vpop.permute.xlu1 %354 }
 0x130   : > { %v356_v59 = vperm.slane %v355_v57, %v329_v47  ;;  %v363_v60 = vld [vmem:[#allocation2] sm:$0x1]  ;;  %v508_v47 = vadd.f32 -0.16666654, %v507_v45  ;;  %v513_v57 = vand.u32 3, %v496_v53 }
 0x131   : > { %v1458_v62 = vmul.f32 0.0625, %v363_v60  ;;  %v519_v60 = vxor.u32 2147483648, %v503_v31 }
 0x132   : > { %v358_v0 = vadd.f32 %v356_v59, %v335_v58  ;;  %v509_v52 = vmul.f32 %v508_v47, %v497_v42  ;;  %v668_v58 = vand.u32 3, %v667_v55  ;;  %vm515_vm0 = vcmp.eq.s32.totalorder %v513_v57, 0 }
 0x133   : > { %680 = vrot.lane.b32.xlu2 %v1458_v62, %s1248_s29  ;;  %v767_v1 = vmul.f32 %v766_v61, %v1458_v62  ;;  %v732_v5 = vmul.f32 %v731_v3, %v1458_v62  ;;  %v697_v33 = vmul.f32 %v696_v28, %v1458_v62  ;;  %vm518_vm1 = vcmp.eq.s32.totalorder %v513_v57, 2 }
 0x134   : > { %359 = vst.msk [vmem:[#allocation3] sm:$0x1] %vm303_vm10, %v358_v0  ;;  %v510_v30 = vadd.f32 1.0, %v509_v52  ;;  %vm670_vm2 = vcmp.eq.s32.totalorder %v668_v58, 0  ;;  %vm673_vm3 = vcmp.eq.s32.totalorder %v668_v58, 2  ;;  %vm514_vm4 = vcmp.lt.s32.totalorder %v513_v57, 2 }
 0x135   : > { %769 = vrot.lane.b32.xlu0 %v767_v1, %s1249_s7  ;;  %vm669_vm5 = vcmp.lt.s32.totalorder %v668_v58, 2 }
 0x136   : > { %v511_v56 = vmul.f32 %v510_v30, %v495_v41 }
 0x138   : > { %v516_v59 = vxor.u32 2147483648, %v511_v56  ;;  %v520_v50 = vsel %vm518_vm1, %v519_v60, %v511_v56  ;;  %v675_v0 = vsel %vm673_vm3, %v519_v60, %v511_v56 }
 0x13a   : > { %v517_v61 = vsel %vm515_vm0, %v503_v31, %v516_v59  ;;  %v672_v63 = vsel %vm670_vm2, %v503_v31, %v516_v59 }
 0x13b   : > { %v365_v6 = vld [vmem:[#allocation3] sm:$0x1]  ;;  %734 = vrot.lane.b32.xlu2 %v732_v5, %s1249_s7  ;;  %v521_v1 = vsel %vm514_vm4, %v517_v61, %v520_v50  ;;  %v676_v2 = vsel %vm669_vm5, %v672_v63, %v675_v0 }
 0x13c   : > { %v1467_v9 = vmul.f32 0.0625, %v365_v6  ;;  %v522_v3 = vsel %vm512_vm6, nan, %v521_v1  ;;  %v677_v5 = vsel %vm512_vm6, nan, %v676_v2 }
 0x13d   : > { %v685_v10 = vmul.f32 %v677_v5, %v1458_v62 }
 0x13e   : > { %v744_v11 = vmul.f32 %v743_v7, %v1467_v9  ;;  %v717_v12 = vmul.f32 %v716_v8, %v1467_v9  ;;  %v779_v15 = vmul.f32 %v778_v13, %v1467_v9  ;;  %v752_v21 = vmul.f32 %v751_v16, %v1467_v9 }
 0x13f   : > { %v787_v27 = vmul.f32 %v786_v22, %v1467_v9  ;;  %v709_v38 = vmul.f32 %v708_v34, %v1467_v9  ;;  %v678_v7 = vmul.f32 %v522_v3, %v1458_v62  ;;  %v727_v13 = vstv %s967_s3 }
 0x140   : > { %746 = vrot.lane.b32.xlu1 %v744_v11, %s1248_s29  ;;  %719 = vrot.lane.b32.xlu0 %v717_v12, %s1249_s7  ;;  %v724_v12 = vstv %s966_s27  ;;  %v689_v16 = vstv %s688_s19  ;;  %v740_v28 = vmul.f32 %v739_v20, %v1467_v9  ;;  %v775_v39 = vmul.f32 %v774_v37, %v1467_v9  ;;  %s1161_s27 = sshra.s32 %s823_s22, 4  ;;  %s1162_s27 = int_to_ptr.hbm [resolvable:$true] %s1161_s27 }
 0x141   : > { %v705_v52 = vmul.f32 %v704_v51, %v1467_v9  ;;  %s1163_s18 = scalar_lea.hbm %s1162_s27, 1  ;;  %p1168_p11 = scmp.lt.s32.totalorder %s1162_s27, %s1539_s4 }
 0x142   : > { %p1164_p2 = scmp.ne.s32.totalorder %s1162_s27, %s1163_s18  ;;  %p1169_p12 = scmp.lt.s32.totalorder %s1167_s23, %s1163_s18 }
 0x143   : > { %781 = vrot.lane.b32.xlu2 %v779_v15, %s1248_s29 }
 0x144   : > { %p1165_p4 = pnand %p1164_p2, %p1355_p9  ;;  %p1170_p13 = por %p1169_p12, %p1168_p11 }
 0x146   : > { %p1166_p8 = pneg %p1165_p4 }
 0x148   : > { %754 = vrot.lane.b32.xlu1 %v752_v21, %s1249_s7  ;;  %p1171_p0 = pnand %p1170_p13, %p1166_p8 }
 0x14b   : > { %789 = vrot.lane.b32.xlu2 %v787_v27, %s1249_s7 }
 0x150   : > { %699 = vrot.lane.b32.xlu1 %v697_v33, %s1249_s7 }
 0x153   : > { %711 = vrot.lane.b32.xlu2 %v709_v38, %s1248_s29  ;;  %s1251_s29 = smov 1  }
 0x18d   : > { %v681_v6 = vpop.permute.xlu2 %680 }
 0x18e   : > { %v683_v8 = vmul.f32 %v681_v6, %v677_v5  ;;  %v686_v11 = vmul.f32 %v681_v6, %v522_v3 }
 0x190   : > { %v684_v14 = vsub.f32 %v678_v7, %v683_v8  ;;  %v687_v15 = vadd.f32 %v686_v11, %v685_v10 }
 0x192   : > { %v725_v17 = vmul.f32 %v724_v12, %v684_v14  ;;  %v728_v19 = vmul.f32 %v727_v13, %v687_v15  ;;  %v690_v21 = vmul.f32 %v689_v16, %v684_v14  ;;  %v693_v22 = vmul.f32 %v692_v18, %v687_v15 }
 0x193   : > { %v760_v33 = vmul.f32 %v759_v29, %v684_v14  ;;  %v763_v34 = vmul.f32 %v762_v32, %v687_v15 }
 0x194   : > { %v729_v23 = vadd.f32 %v728_v19, %v725_v17  ;;  %v694_v26 = vadd.f32 %v693_v22, %v690_v21 }
 0x195   : > { %v735_v24 = vpop.permute.xlu2 %734  ;;  %v764_v38 = vadd.f32 %v763_v34, %v760_v33 }
 0x196   : > { %v737_v27 = vadd.f32 %v735_v24, %v729_v23 }
 0x198   : > { %v741_v62 = vadd.f32 %v740_v28, %v737_v27 }
 0x19d   : > { %v782_v36 = vpop.permute.xlu2 %781 }
 0x1a5   : > { %v790_v43 = vpop.permute.xlu2 %789 }
 0x1a7   : > { %v770_v4 = vpop.permute.xlu0 %769 }
 0x1a8   : > { %v772_v40 = vadd.f32 %v770_v4, %v764_v38 }
 0x1aa   : > { %v776_v41 = vadd.f32 %v775_v39, %v772_v40 }
 0x1ac   : > { %v784_v42 = vadd.f32 %v782_v36, %v776_v41 }
 0x1ad   : > { %v712_v30 = vpop.permute.xlu2 %711 }
 0x1ae   : > { %v792_v44 = vadd.f32 %v790_v43, %v784_v42 }
 0x1b0   : > { %v799_v25 = vperm.slane %v792_v44, 0 }
 0x1b2   : > { %v747_v35 = vpop.permute.xlu1 %746  ;;  %800 = vrot.lane.b32.xlu2 %v799_v25, %s1250_s12  ;;  %v720_v31 = vpop.permute.xlu0 %719 }
 0x1b3   : > { %v749_v45 = vadd.f32 %v747_v35, %v741_v62 }
 0x1ba   : > { %v755_v46 = vpop.permute.xlu1 %754 }
 0x1bb   : > { %v757_v49 = vadd.f32 %v755_v46, %v749_v45 }
 0x1bd   : > { %v794_v47 = vperm.slane %v757_v49, 0 }
 0x1bf   : > { %795 = vrot.lane.b32.xlu1 %v794_v47, %s1251_s29 }
 0x1c2   : > { %v700_v48 = vpop.permute.xlu1 %699 }
 0x1c3   : > { %v702_v53 = vadd.f32 %v700_v48, %v694_v26 }
 0x1c5   : > { %v706_v54 = vadd.f32 %v705_v52, %v702_v53 }
 0x1c7   : > { %v714_v55 = vadd.f32 %v712_v30, %v706_v54 }
 0x1c9   : > { %v722_v56 = vadd.f32 %v720_v31, %v714_v55 }
 0x20c   : > { %v801_v9 = vpop.permute.xlu2 %800 }
 0x231   : > { %v796_v57 = vpop.permute.xlu1 %795 }
 0x232   : > { %v804_v58 = vsel %vm803_vm7, %v722_v56, %v796_v57 }
 0x233   : > { %v806_v59 = vsel %vm805_vm8, %v804_v58, %v801_v9 }
 0x234   : > { %808 = vst.msk [vmem:[%s295_s6] sm:$0x1] %vm807_vm9, %v806_v59 }
 0x235   : > { %1174 = shalt.err (!%p1171_p0)
}
 0x236   : > { %988 = dma.vmem_to_hbm [thread:$0]  (%p1355_p9), %s821_s14, 16, %s823_s22, %s810_s13  }
 0x237 PF: > { %s834_s21 = sand.u32 1, %s1217_s15   ;;  %p1552_p3 = scmp.ge.s32.totalorder %s1237_s20, 2 }
 0x238   : > { %s835_s5 = scalar_lea.sflag [#allocation6], %s834_s21 }
 0x239   : > { %p1002_p5 = pnand %p1552_p3, %p1326_p6 }
 0x23b   : > { %p1003_p7 = pneg %p1002_p5 }
 0x23d   : > { %1212 = dma.done.wait (%p1003_p7), %s835_s5, 16  }
 0x23e   : > { %1214 = vsyncadd (%p1003_p7), %s835_s5, 4294967280  ;;  %s24_s20 = sadd.s32 1, %s1237_s20   ;;  %s1553_s18 = sld [smem:[#allocation16_spill]] }
 0x23f   : > { %p21_p10 = scmp.ge.s32.totalorder %s24_s20, 4   ;;  %s1554_s19 = sld [smem:[#allocation17_spill]] }
 0x240   : > { %s1555_s15 = smov %s1221_s16  ;;  %s1556_s16 = smov %s1225_s17 }
 0x241   : > { %s1557_s17 = smov %s1361_s11  ;;  %23 = sbr.rel (!%p21_p10) target bundleno = 11 (0xb), region = 116 }
 0x246   :  { %840 = vsyncpa [#allocation5], 1 }
 0x247   :  { %842 = vsyncpa [#allocation5 + $0x1], 1 }
 0x248   :  { %843 = vsyncpa [#allocation9], 1 }
 0x249   :  { %845 = vsyncpa [#allocation9 + $0x1], 1 }
 0x24a   :  { %846 = vsyncpa [#allocation6], 1 }
 0x24b   :  { %848 = vsyncpa [#allocation6 + $0x1], 1 }
 0x24c   :  { %849 = vsyncpa [#allocation7], 1 }
 0x24d   :  { %851 = vsyncpa [#allocation7 + $0x1], 1 }

</bundles_post_ra>
